<compile_context>
chip_gen: v7x
topology: tpu7x:2x2x1
jax: 0.10.0
libtpu: 0.0.40
codegen_flags: <defaults>
</compile_context>

<pallas_src>
import jax
import jax.numpy as jnp
from jax import lax
from jax.experimental import pallas as pl
from jax.experimental.pallas import tpu as pltpu


_TARGET_TILE_BYTES = 4 * 1024 * 1024      # ~4 MiB of x per grid step
_VMEM_LIMIT_BYTES = 32 * 1024 * 1024      # safe per-TensorCore on v5e/v6e/v7x
_FAST_PATH_BYTES = 256 * 1024             # below this, XLA fusion beats launch cost


def _pseudo_svm_col0_kernel(x_ref, w0_ref, b0_ref, y_ref):
    x = x_ref[...]                      # (tn, insize)  -- streamed per grid step
    w0 = w0_ref[...]                    # (1, insize)   -- resident across grid
    # (1,K) . (tn,K)^T -> (1, tn): lane-dense result, x stays in natural layout
    # (transposed-RHS contraction handled by the MXU weight latch, not the XLU).
    acc = lax.dot_general(
        w0, x,
        dimension_numbers=(((1,), (1,)), ((), ())),
        preferred_element_type=jnp.float32,
    )
    y_ref[...] = (acc + b0_ref[0]).astype(y_ref.dtype)


def pseudo_svm_forward(x, weight, bias, *, tile_rows=None, force_kernel=False):
    """Equivalent of PseudoSVM.forward with self.sigmoid == False.

    x: (N, insize); weight: (outsize, insize); bias: (outsize,). Returns (N,) f32.
    """
    n, insize = x.shape
    itemsize = x.dtype.itemsize
    row_bytes = insize * itemsize

    # Only output feature 0 is ever used -> slice parameters up front
    # (outsize-fold less weight DMA, MXU work and output writeback).
    w0 = weight[0:1, :].astype(x.dtype)          # (1, insize)
    b0 = bias[0:1].astype(jnp.float32)           # (1,) scalar, lives in SMEM

    # Toy sizes: pallas_call launch + pipeline setup dominates; let XLA fuse.
    if not force_kernel and n * row_bytes < _FAST_PATH_BYTES:
        return (x @ w0[0] + b0[0]).astype(jnp.float32)

    # Row tile: sized by bytes, multiple of 128 (satisfies the (8,128) rule for
    # both the (tn, insize) input block and the (1, tn) output block), clamped
    # to the full array for small N (full-extent blocks are exempt).
    if tile_rows is None:
        tn = max(128, (_TARGET_TILE_BYTES // row_bytes) // 128 * 128)
    else:
        tn = tile_rows
    if tn >= n:
        tn = n
    else:
        assert tn % 128 == 0, "row tile must be a multiple of 128 when tiling"

    num_tiles = pl.cdiv(n, tn)
    grid = (num_tiles,)

    # x stream: triple-buffer once there are enough steps to hide DMA ramp;
    # <= 3 * 4 MiB of x + (1, tn) output blocks + w0 stays well under 32 MiB.
    if num_tiles >= 3:
        x_spec = pl.BlockSpec((tn, insize), lambda i: (i, 0),
                              pipeline_mode=pl.Buffered(3))
    else:
        x_spec = pl.BlockSpec((tn, insize), lambda i: (i, 0))

    cost = pl.CostEstimate(
        flops=2 * n * insize,
        transcendentals=0,
        bytes_accessed=n * row_bytes + n * 4 + insize * itemsize + 4,
    )

    y = pl.pallas_call(
        _pseudo_svm_col0_kernel,
        out_shape=jax.ShapeDtypeStruct((1, n), jnp.float32),
        grid=grid,
        in_specs=[
            x_spec,                                              # x row tile (streamed)
            pl.BlockSpec((1, insize), lambda i: (0, 0)),         # W row 0 (resident)
            pl.BlockSpec(memory_space=pltpu.MemorySpace.SMEM),   # scalar bias b[0]
        ],
        out_specs=pl.BlockSpec((1, tn), lambda i: (0, i)),       # lane-dense (1, N)
        compiler_params=pltpu.CompilerParams(
            dimension_semantics=("parallel",),    # megacore row split on v7x
            vmem_limit_bytes=_VMEM_LIMIT_BYTES,   # v5e's scoped default is 16 MiB
        ),
        cost_estimate=cost,
    )(x, w0, b0)

    return y[0]                                                  # (N,), == .T[0]


if __name__ == "__main__":
    key = jax.random.PRNGKey(0)
    k_x, k_w, k_b, k_x2 = jax.random.split(key, 4)

    batch = 8
    insize = 32
    outsize = 16

    # Deterministic parameter init (mimics nn.Linear's U(-1/sqrt(in), 1/sqrt(in))).
    bound = 1.0 / (insize ** 0.5)
    weight = jax.random.uniform(k_w, (outsize, insize), jnp.float32, -bound, bound)
    bias = jax.random.uniform(k_b, (outsize,), jnp.float32, -bound, bound)

    # Small-shape check through the kernel (single full-array block, grid=(1,)).
    x = jax.random.normal(k_x, (batch, insize), jnp.float32)
    out = pseudo_svm_forward(x, weight, bias, force_kernel=True)
    out = jax.block_until_ready(out)
    ref = (x @ weight.T + bias).T[0]
    assert out.shape == (batch,)
    assert jnp.allclose(out, ref, atol=1e-5, rtol=1e-5)

    # Tiled path with a ragged edge block (no wrapper padding) + multi-buffering.
    big_batch = 777
    x_big = jax.random.normal(k_x2, (big_batch, insize), jnp.float32)
    out_big = pseudo_svm_forward(x_big, weight, bias, tile_rows=256, force_kernel=True)
    out_big = jax.block_until_ready(out_big)
    ref_big = (x_big @ weight.T + bias).T[0]
    assert out_big.shape == (big_batch,)
    assert jnp.allclose(out_big, ref_big, atol=1e-5, rtol=1e-5)

    # Fast path (plain XLA fusion for tiny inputs) must match too.
    out_fast = jax.block_until_ready(pseudo_svm_forward(x, weight, bias))
    assert jnp.allclose(out_fast, ref, atol=1e-5, rtol=1e-5)

    print("KERNEL_OK")
</pallas_src>

<mosaic_0001>
module attributes {stable_mosaic.version = 11 : i64} {
  func.func @_pseudo_svm_col0_kernel(%arg0: i32, %arg1: memref<8x32xf32, #tpu.memory_space<vmem>>, %arg2: memref<1x32xf32, #tpu.memory_space<vmem>>, %arg3: memref<1xf32, #tpu.memory_space<smem>>, %arg4: memref<1x8xf32, #tpu.memory_space<vmem>>) attributes {dimension_semantics = [#tpu.dimension_semantics<parallel>], iteration_bounds = array<i64: 1>, scalar_prefetch = 0 : i64, scratch_operands = 0 : i64, tpu.core_type = #tpu.core_type<tc>, window_params = [{transform_indices = @transform_0, window_bounds = array<i64: 8, 32>}, {pipeline_mode = #tpu.pipeline_mode<synchronous>, transform_indices = @transform_1, window_bounds = array<i64: 1, 32>}, {transform_indices = @transform_2, window_bounds = array<i64: 1>}, {transform_indices = @transform_3, window_bounds = array<i64: 1, 8>}]} {
    %c0 = arith.constant 0 : index
    %c0_0 = arith.constant 0 : index
    %0 = vector.load %arg1[%c0, %c0_0] : memref<8x32xf32, #tpu.memory_space<vmem>>, vector<8x32xf32>
    %c0_1 = arith.constant 0 : index
    %c0_2 = arith.constant 0 : index
    %1 = vector.load %arg2[%c0_1, %c0_2] : memref<1x32xf32, #tpu.memory_space<vmem>>, vector<1x32xf32>
    %cst = arith.constant dense<0.000000e+00> : vector<1x8xf32>
    %2 = tpu.matmul %1, %0, %cst {dimension_numbers = #tpu.dot_dimension_numbers<[1], [1], [0], [0], [0, 0, 1, 0], [], []>} : vector<1x32xf32>, vector<8x32xf32>, vector<1x8xf32> -> vector<1x8xf32>
    %c0_3 = arith.constant 0 : index
    %3 = memref.load %arg3[%c0_3] : memref<1xf32, #tpu.memory_space<smem>>
    %4 = vector.broadcast %3 : f32 to vector<1x8xf32>
    %5 = arith.addf %2, %4 : vector<1x8xf32>
    %c0_4 = arith.constant 0 : index
    %c0_5 = arith.constant 0 : index
    %6 = vector.load %arg4[%c0_4, %c0_5] : memref<1x8xf32, #tpu.memory_space<vmem>>, vector<1x8xf32>
    tpu.vector_store %arg4[%c0_4, %c0_5], %5 {strides = array<i32>} : memref<1x8xf32, #tpu.memory_space<vmem>>, vector<1x8xf32>,
    return
  }
  func.func @transform_0(%arg0: i32) -> (i32, i32) {
    %c0_i32 = arith.constant 0 : i32
    %c0_i32_0 = arith.constant 0 : i32
    return %arg0, %c0_i32 : i32, i32
  }
  func.func @transform_1(%arg0: i32) -> (i32, i32) {
    %c0_i32 = arith.constant 0 : i32
    %c0_i32_0 = arith.constant 0 : i32
    %c0_i32_1 = arith.constant 0 : i32
    return %c0_i32, %c0_i32_0 : i32, i32
  }
  func.func @transform_2(%arg0: i32) -> i32 {
    %c0_i32 = arith.constant 0 : i32
    %c0_i32_0 = arith.constant 0 : i32
    return %c0_i32 : i32
  }
  func.func @transform_3(%arg0: i32) -> (i32, i32) {
    %c0_i32 = arith.constant 0 : i32
    %c0_i32_0 = arith.constant 0 : i32
    return %c0_i32, %arg0 : i32, i32
  }
}

</mosaic_0001>

<bundles_post_ra>
// kernel: tpu_custom_call.1
= control target key start
LH: loop header
LB: loop body
LE: loop exit
PB: predicated region body
PF: predicated region fallthrough
CT: control target
= control target key end

     0   :  { %9 = vsyncpa [#allocation4], 0  ;;  %s241_s0 = inlined_call_operand.hbm [shape: f32[8,32], index: 0, kind: input, shape index: {}]   ;;  %s242_s1 = inlined_call_operand.vmem [shape: f32[1,32], index: 1, kind: input, shape index: {}]   ;;  %s243_s2 = inlined_call_operand.<no memory space> [shape: f32[1], index: 2, kind: input, shape index: {}]   ;;  %s244_s3 = inlined_call_operand.hbm [shape: f32[1,8], index: 3, kind: output, shape index: {}]  }
   0x1   :  { %10 = vsyncpa [#allocation5], 0  ;;  %s187_s12 = smov [#allocation3]   ;;  %s139_s16 = scalar_lea.hbm %s241_s0, 128 }
   0x2   :  { %s17_s13 = sshll.u32 %s187_s12, 4  ;;  %p140_p0 = scmp.ne.s32.totalorder %s241_s0, %s139_s16  ;;  %s18_s13 = int_to_ptr.vmem [resolvable:$true] %s17_s13 }
   0x3   :  { %p143_p1 = scmp.lt.u32.totalorder %s139_s16, %s241_s0 }
   0x5   :  { %p145_p2 = pnand %p143_p1, %p140_p0 }
   0x7   :  { %148 = shalt.err (!%p145_p2)
}
   0x8   :  { %s149_s21 = scalar_lea.vmem %s18_s13, 128  ;;  %p154_p4 = scmp.lt.s32.totalorder %s18_s13, %s18_s13 }
   0x9   :  { %p150_p3 = scmp.ne.s32.totalorder %s18_s13, %s149_s21  ;;  %p155_p5 = scmp.lt.s32.totalorder %s149_s21, %s149_s21 }
   0xb   :  { %p156_p6 = por %p155_p5, %p154_p4 }
   0xd   :  { %p157_p7 = pnand %p156_p6, %p150_p3 }
   0xf   :  { %160 = shalt.err (!%p157_p7)
}
  0x10   :  { %20 = dma.hbm_to_vmem [thread:$0]  %s241_s0, 128, %s18_s13, [#allocation4]  }
  0x11   :  { %183 = dma.done.wait [#allocation4], 128  }
  0x12   :  { %184 = vsyncadd [#allocation4], 4294967168  ;;  %v188_v0 = vmov 0.0   ;;  %vm189_vm0 = vmmov 0   ;;  %vm32_vm1 = vcmask 261120   ;;  %v28_v1 = vld [vmem:[#allocation3] sm:$0xff]  ;;  %v31_v3 = vstv %s243_s2 }
  0x13   :  { %130 = vmatprep.subr.mxu0 %v188_v0  ;;  %132 = vmatprep.mubr.msk.f32.mxu0 %vm189_vm0, %v188_v0  ;;  %v29_v2 = vld [vmem:[%s242_s1] sm:$0x1]  ;;  %s190_s28 = smov [#allocation6]   ;;  %vm109_vm2 = vcmask 57344  }
  0x14   :  { %131 = vmatpush3.xpose.msk.msra.mxu0 %vm32_vm1, %v28_v1  ;;  %s117_s0 = sshll.u32 %s190_s28, 4  ;;  %s118_s0 = int_to_ptr.vmem [resolvable:$true] %s117_s0 }
  0x15   :  { %s161_s29 = scalar_lea.vmem %s118_s0, 16  ;;  %s165_s30 = scalar_lea.vmem %s118_s0, 32 }
  0x16   :  { %p162_p8 = scmp.ne.s32.totalorder %s118_s0, %s161_s29  ;;  %p166_p9 = scmp.lt.s32.totalorder %s118_s0, %s118_s0 }
  0x17   :  { %133 = vmatmul.mubr.msk.f32.vlgmr.msra.gmra.mrb[0].mxu0 %vm32_vm1, %v29_v2  ;;  %p167_p10 = scmp.lt.s32.totalorder %s165_s30, %s161_s29 }
  0x19   :  { %p168_p11 = por %p167_p10, %p166_p9 }
  0x1b   :  { %p169_p12 = pnand %p168_p11, %p162_p8 }
  0xea   :  { %v105_v4 = vpop.f32.mrb[0].mxu0 }
  0xeb   :  { %v106_v5 = vadd.f32 %v105_v4, %v31_v3  ;;  %v134_v6 = vpop.f32.mrb[1].mxu0 }
  0xed   :  { %110 = vst.msk [vmem:[#allocation6] sm:$0x1] %vm109_vm2, %v106_v5 }
  0xee   :  { %172 = shalt.err (!%p169_p12)
}
  0xef   :  { %s173_s2 = scalar_lea.hbm %s244_s3, 16 }
  0xf0   :  { %p174_p13 = scmp.ne.s32.totalorder %s244_s3, %s173_s2  ;;  %p177_p0 = scmp.lt.u32.totalorder %s173_s2, %s244_s3 }
  0xf2   :  { %p179_p1 = pnand %p177_p0, %p174_p13 }
  0xf4   :  { %182 = shalt.err (!%p179_p1)
}
  0xf5   :  { %120 = dma.vmem_to_hbm [thread:$0]  %s118_s0, 16, %s244_s3, [#allocation5]  }
  0xf6   :  { %185 = dma.done.wait [#allocation5], 16  }
  0xf7   :  { %186 = vsyncadd [#allocation5], 4294967280 }
  0xf8   :  { %124 = vsyncpa [#allocation4], 1 }
  0xf9   :  { %125 = vsyncpa [#allocation5], 1 }

</bundles_post_ra>
